<compile_context>
chip_gen: v7x
topology: tpu7x:2x2x1
jax: 0.10.0
libtpu: 0.0.40
codegen_flags: <defaults>
</compile_context>

<pallas_src>
import jax
import jax.numpy as jnp
from jax import lax
from jax.experimental import pallas as pl
from jax.experimental.pallas import tpu as pltpu


def _round_up(x, m):
    return (x + m - 1) // m * m


# ----------------------------------------------------------------------------
# Fused tiny-LM forward kernel (one token tile per grid step):
#   h      = gelu(x @ W1 + b1)                       (bf16 MXU, f32 accum)
#   logits = h @ W2                                  (bf16 MXU, f32 accum)
#   nll_i  = (logsumexp(logits_i) - logits_i[label]) * valid_i
#   stats  = [sum(nll), sum(valid)]  (lane-dense (8,128) block, row 0)
# ----------------------------------------------------------------------------
def _lm_forward_kernel(x_ref, w1_ref, b1_ref, w2_ref, mask_ref, labels_ref,
                       logits_ref, stats_ref):
    # first matmul + bias + GELU (f32 accumulator, f32 VPU/EUP math)
    h = jnp.dot(x_ref[...], w1_ref[...], preferred_element_type=jnp.float32)
    h = h + b1_ref[...]
    # TODO(synk): PyTorch nn.GELU default is exact erf; tanh approximation used
    # here (erf lowering in Mosaic is not guaranteed) -> small numeric drift.
    h = jax.nn.gelu(h, approximate=True)

    # second matmul -> logits (f32 out)
    logits = jnp.dot(h.astype(jnp.bfloat16), w2_ref[...],
                     preferred_element_type=jnp.float32)          # (TN, V)
    logits_ref[...] = logits

    # masked, ignore_index-aware cross entropy, reduced to per-tile partials
    labels = labels_ref[...]                                      # (TN, 1) i32
    valid = mask_ref[...] * (labels >= 0).astype(jnp.float32)     # (TN, 1)
    safe_labels = jnp.maximum(labels, 0)

    m = jnp.max(logits, axis=-1, keepdims=True)                   # (TN, 1)
    lse = m + jnp.log(jnp.sum(jnp.exp(logits - m), axis=-1, keepdims=True))
    col = lax.broadcasted_iota(jnp.int32, logits.shape, 1)        # (TN, V)
    logit_label = jnp.sum(jnp.where(col == safe_labels, logits, 0.0),
                          axis=-1, keepdims=True)                 # (TN, 1)
    nll = (lse - logit_label) * valid                             # (TN, 1)

    loss_sum = jnp.sum(nll)
    count = jnp.sum(valid)

    # lane-dense stats block: [0,0,0]=loss_sum, [0,0,1]=count, rest zero
    row = lax.broadcasted_iota(jnp.int32, stats_ref.shape, 1)
    lane = lax.broadcasted_iota(jnp.int32, stats_ref.shape, 2)
    stats_ref[...] = jnp.where(
        (row == 0) & (lane == 0), loss_sum,
        jnp.where((row == 0) & (lane == 1), count, 0.0))


def _lm_forward_pallas(x, w1, b1, w2, mask, labels, *, tn):
    n_pad, h = x.shape
    v = w2.shape[1]
    n_tiles = n_pad // tn

    flops = 2 * n_pad * h * h + 2 * n_pad * h * v
    transcendentals = n_pad * (v + h)                 # exp in softmax, gelu tanh
    bytes_accessed = (x.size * 2 + w1.size * 2 + b1.size * 4 + w2.size * 2
                      + mask.size * 4 + labels.size * 4
                      + n_pad * v * 4 + n_tiles * 8 * 128 * 4)

    logits, stats = pl.pallas_call(
        _lm_forward_kernel,
        out_shape=(jax.ShapeDtypeStruct((n_pad, v), jnp.float32),
                   jax.ShapeDtypeStruct((n_tiles, 8, 128), jnp.float32)),
        grid=(n_tiles,),
        in_specs=[
            pl.BlockSpec((tn, h), lambda i: (i, 0)),     # x tile
            pl.BlockSpec((h, h), lambda i: (0, 0)),      # W1 resident
            pl.BlockSpec((1, h), lambda i: (0, 0)),      # b1 resident
            pl.BlockSpec((h, v), lambda i: (0, 0)),      # W2 resident
            pl.BlockSpec((tn, 1), lambda i: (i, 0)),     # attention mask tile
            pl.BlockSpec((tn, 1), lambda i: (i, 0)),     # labels tile
        ],
        out_specs=[
            pl.BlockSpec((tn, v), lambda i: (i, 0)),     # logits tile
            pl.BlockSpec((1, 8, 128), lambda i: (i, 0, 0)),  # loss partials
        ],
        compiler_params=pltpu.CompilerParams(
            dimension_semantics=("parallel",)),          # megacore on v7x
        cost_estimate=pl.CostEstimate(
            flops=flops, transcendentals=transcendentals,
            bytes_accessed=bytes_accessed),
    )(x, w1, b1, w2, mask, labels)
    return logits, stats


# ----------------------------------------------------------------------------
# Tiny LM module (HF-style: returns dict with "loss" and "logits")
# ----------------------------------------------------------------------------
def init_tiny_lm(key, vocab_size, hidden):
    k_emb, k_w1, k_w2 = jax.random.split(key, 3)
    return {
        "emb": jax.random.normal(k_emb, (vocab_size, hidden), jnp.float32) * 0.02,
        "w1":  jax.random.normal(k_w1, (hidden, hidden), jnp.float32) * 0.02,
        "b1":  jnp.zeros((1, hidden), jnp.float32),
        "w2":  jax.random.normal(k_w2, (hidden, vocab_size), jnp.float32) * 0.02,
    }


def tiny_lm_forward(params, input_ids, attention_mask, labels, *, tn=512):
    # glue: embedding gather + flatten to token-major layout
    # TODO(synk): embedding gather could be fused into the kernel via
    # PrefetchScalarGridSpec + pl.Element row-gather to skip the HBM round-trip.
    emb = jnp.take(params["emb"], input_ids, axis=0)        # (B, S, H)
    B, S, H = emb.shape
    V = params["w2"].shape[1]
    N = B * S

    # tile the token axis; pad to a multiple of the tile (padded rows masked out)
    tn = min(tn, _round_up(N, 8))
    n_pad = _round_up(N, tn)
    pad = n_pad - N

    x = emb.reshape(N, H).astype(jnp.bfloat16)
    mask = attention_mask.reshape(N, 1).astype(jnp.float32)
    labs = labels.reshape(N, 1).astype(jnp.int32)
    if pad:
        x = jnp.pad(x, ((0, pad), (0, 0)))
        mask = jnp.pad(mask, ((0, pad), (0, 0)))
        labs = jnp.pad(labs, ((0, pad), (0, 0)), constant_values=-1)

    logits_flat, stats = _lm_forward_pallas(
        x,
        params["w1"].astype(jnp.bfloat16),
        params["b1"],
        params["w2"].astype(jnp.bfloat16),
        mask, labs, tn=tn)

    loss_sum = jnp.sum(stats[:, 0, 0])
    count = jnp.sum(stats[:, 0, 1])
    loss = loss_sum / jnp.maximum(count, 1.0)
    # TODO(synk): no causal label shift applied; caller must pre-shift labels.
    return {"loss": loss, "logits": logits_flat[:N].reshape(B, S, V)}


# ----------------------------------------------------------------------------
# DistillationModel.forward
# ----------------------------------------------------------------------------
def distillation_forward(student_params, teacher_params,
                         student_input_ids, student_attention_mask, student_labels,
                         teacher_input_ids, teacher_attention_mask, teacher_labels):
    # teacher under "no_grad" -> stop_gradient on its outputs
    teacher_output = tiny_lm_forward(
        teacher_params, teacher_input_ids, teacher_attention_mask, teacher_labels)
    teacher_output = jax.tree_util.tree_map(lax.stop_gradient, teacher_output)

    student_output = tiny_lm_forward(
        student_params, student_input_ids, student_attention_mask, student_labels)
    return (student_output, teacher_output)


if __name__ == "__main__":
    B, S = 2, 8
    VOCAB = 256          # 128/256-aligned so the MXU is not fed 32-wide tiles
    H_STUDENT, H_TEACHER = 128, 256

    key = jax.random.PRNGKey(0)
    k_sp, k_tp, k_sid, k_tid, k_slab, k_tlab = jax.random.split(key, 6)

    student_params = init_tiny_lm(k_sp, VOCAB, H_STUDENT)
    teacher_params = init_tiny_lm(k_tp, VOCAB, H_TEACHER)

    student_input_ids = jax.random.randint(k_sid, (B, S), 0, VOCAB, jnp.int32)
    teacher_input_ids = jax.random.randint(k_tid, (B, S), 0, VOCAB, jnp.int32)
    student_labels = jax.random.randint(k_slab, (B, S), 0, VOCAB, jnp.int32)
    teacher_labels = jax.random.randint(k_tlab, (B, S), 0, VOCAB, jnp.int32)

    # exercise ignore_index handling (HF convention: -100 = ignored token)
    student_labels = student_labels.at[0, 0].set(-100)

    # attention mask: last position of batch element 1 is padding
    student_attention_mask = jnp.ones((B, S), jnp.int32).at[1, -1].set(0)
    teacher_attention_mask = jnp.ones((B, S), jnp.int32).at[1, -1].set(0)

    fwd = jax.jit(distillation_forward)
    student_out, teacher_out = fwd(
        student_params, teacher_params,
        student_input_ids, student_attention_mask, student_labels,
        teacher_input_ids, teacher_attention_mask, teacher_labels)

    jax.block_until_ready((student_out, teacher_out))

    assert student_out["logits"].shape == (B, S, VOCAB)
    assert teacher_out["logits"].shape == (B, S, VOCAB)
    assert student_out["loss"].shape == ()
    assert teacher_out["loss"].shape == ()
    assert bool(jnp.isfinite(student_out["loss"]))
    assert bool(jnp.isfinite(teacher_out["loss"]))
    print("KERNEL_OK")
</pallas_src>

<mosaic_0001>
module attributes {stable_mosaic.version = 11 : i64} {
  func.func @_lm_forward_kernel(%arg0: i32, %arg1: memref<16x128xbf16, #tpu.memory_space<vmem>>, %arg2: memref<128x128xbf16, #tpu.memory_space<vmem>>, %arg3: memref<1x128xf32, #tpu.memory_space<vmem>>, %arg4: memref<128x256xbf16, #tpu.memory_space<vmem>>, %arg5: memref<16x1xf32, #tpu.memory_space<vmem>>, %arg6: memref<16x1xi32, #tpu.memory_space<vmem>>, %arg7: memref<16x256xf32, #tpu.memory_space<vmem>>, %arg8: memref<1x8x128xf32, #tpu.memory_space<vmem>>) attributes {dimension_semantics = [#tpu.dimension_semantics<parallel>], iteration_bounds = array<i64: 1>, scalar_prefetch = 0 : i64, scratch_operands = 0 : i64, tpu.core_type = #tpu.core_type<tc>, window_params = [{transform_indices = @transform_0, window_bounds = array<i64: 16, 128>}, {pipeline_mode = #tpu.pipeline_mode<synchronous>, transform_indices = @transform_1, window_bounds = array<i64: 128, 128>}, {pipeline_mode = #tpu.pipeline_mode<synchronous>, transform_indices = @transform_2, window_bounds = array<i64: 1, 128>}, {pipeline_mode = #tpu.pipeline_mode<synchronous>, transform_indices = @transform_3, window_bounds = array<i64: 128, 256>}, {transform_indices = @transform_4, window_bounds = array<i64: 16, 1>}, {transform_indices = @transform_5, window_bounds = array<i64: 16, 1>}, {transform_indices = @transform_6, window_bounds = array<i64: 16, 256>}, {transform_indices = @transform_7, window_bounds = array<i64: 1, 8, 128>}]} {
    %c0 = arith.constant 0 : index
    %c0_0 = arith.constant 0 : index
    %0 = vector.load %arg1[%c0, %c0_0] : memref<16x128xbf16, #tpu.memory_space<vmem>>, vector<16x128xbf16>
    %c0_1 = arith.constant 0 : index
    %c0_2 = arith.constant 0 : index
    %1 = vector.load %arg2[%c0_1, %c0_2] : memref<128x128xbf16, #tpu.memory_space<vmem>>, vector<128x128xbf16>
    %cst = arith.constant dense<0.000000e+00> : vector<16x128xf32>
    %2 = tpu.matmul %0, %1, %cst {dimension_numbers = #tpu.dot_dimension_numbers<[1], [0], [0], [1], [0, 0, 1, 1], [], []>} : vector<16x128xbf16>, vector<128x128xbf16>, vector<16x128xf32> -> vector<16x128xf32>
    %c0_3 = arith.constant 0 : index
    %c0_4 = arith.constant 0 : index
    %3 = vector.load %arg3[%c0_3, %c0_4] : memref<1x128xf32, #tpu.memory_space<vmem>>, vector<1x128xf32>
    %4 = vector.broadcast %3 : vector<1x128xf32> to vector<16x128xf32>
    %5 = arith.addf %2, %4 : vector<16x128xf32>
    %6 = arith.mulf %5, %5 : vector<16x128xf32>
    %7 = arith.mulf %5, %6 : vector<16x128xf32>
    %cst_5 = arith.constant 4.471500e-02 : f32
    %8 = vector.broadcast %cst_5 : f32 to vector<16x128xf32>
    %9 = arith.mulf %8, %7 : vector<16x128xf32>
    %10 = arith.addf %5, %9 : vector<16x128xf32>
    %cst_6 = arith.constant 0.797884583 : f32
    %11 = vector.broadcast %cst_6 : f32 to vector<16x128xf32>
    %12 = arith.mulf %11, %10 : vector<16x128xf32>
    %13 = math.tanh %12 : vector<16x128xf32>
    %cst_7 = arith.constant 1.000000e+00 : f32
    %14 = vector.broadcast %cst_7 : f32 to vector<16x128xf32>
    %15 = arith.addf %14, %13 : vector<16x128xf32>
    %cst_8 = arith.constant 5.000000e-01 : f32
    %16 = vector.broadcast %cst_8 : f32 to vector<16x128xf32>
    %17 = arith.mulf %16, %15 : vector<16x128xf32>
    %18 = arith.mulf %5, %17 : vector<16x128xf32>
    %19 = arith.truncf %18 : vector<16x128xf32> to vector<16x128xbf16>
    %c0_9 = arith.constant 0 : index
    %c0_10 = arith.constant 0 : index
    %20 = vector.load %arg4[%c0_9, %c0_10] : memref<128x256xbf16, #tpu.memory_space<vmem>>, vector<128x256xbf16>
    %cst_11 = arith.constant dense<0.000000e+00> : vector<16x256xf32>
    %21 = tpu.matmul %19, %20, %cst_11 {dimension_numbers = #tpu.dot_dimension_numbers<[1], [0], [0], [1], [0, 0, 1, 1], [], []>} : vector<16x128xbf16>, vector<128x256xbf16>, vector<16x256xf32> -> vector<16x256xf32>
    %c0_12 = arith.constant 0 : index
    %c0_13 = arith.constant 0 : index
    %22 = vector.load %arg7[%c0_12, %c0_13] : memref<16x256xf32, #tpu.memory_space<vmem>>, vector<16x256xf32>
    tpu.vector_store %arg7[%c0_12, %c0_13], %21 {strides = array<i32>} : memref<16x256xf32, #tpu.memory_space<vmem>>, vector<16x256xf32>,
    %c0_14 = arith.constant 0 : index
    %c0_15 = arith.constant 0 : index
    %23 = vector.load %arg6[%c0_14, %c0_15] : memref<16x1xi32, #tpu.memory_space<vmem>>, vector<16x1xi32>
    %c0_16 = arith.constant 0 : index
    %c0_17 = arith.constant 0 : index
    %24 = vector.load %arg5[%c0_16, %c0_17] : memref<16x1xf32, #tpu.memory_space<vmem>>, vector<16x1xf32>
    %c0_i32 = arith.constant 0 : i32
    %25 = vector.broadcast %c0_i32 : i32 to vector<16x1xi32>
    %26 = arith.cmpi sge, %23, %25 : vector<16x1xi32>
    %27 = arith.extui %26 : vector<16x1xi1> to vector<16x1xi32>
    %28 = arith.sitofp %27 : vector<16x1xi32> to vector<16x1xf32>
    %29 = arith.mulf %24, %28 : vector<16x1xf32>
    %c0_i32_18 = arith.constant 0 : i32
    %30 = vector.broadcast %c0_i32_18 : i32 to vector<16x1xi32>
    %31 = arith.maxsi %23, %30 : vector<16x1xi32>
    %cst_19 = arith.constant dense<0xFF800000> : vector<16xf32>
    %32 = vector.multi_reduction <maximumf>, %21, %cst_19 [1] : vector<16x256xf32> to vector<16xf32>
    %33 = vector.shape_cast %32 : vector<16xf32> to vector<16x1xf32>
    %34 = vector.broadcast %33 : vector<16x1xf32> to vector<16x256xf32>
    %35 = arith.subf %21, %34 : vector<16x256xf32>
    %36 = math.exp %35 : vector<16x256xf32>
    %cst_20 = arith.constant dense<0.000000e+00> : vector<16xf32>
    %37 = vector.multi_reduction <add>, %36, %cst_20 [1] : vector<16x256xf32> to vector<16xf32>
    %38 = vector.shape_cast %37 : vector<16xf32> to vector<16x1xf32>
    %39 = math.log %38 : vector<16x1xf32>
    %40 = arith.addf %33, %39 : vector<16x1xf32>
    %41 = tpu.iota {dimensions = array<i32: 1>} : vector<16x256xi32>
    %42 = vector.broadcast %31 : vector<16x1xi32> to vector<16x256xi32>
    %43 = arith.cmpi eq, %41, %42 : vector<16x256xi32>
    %cst_21 = arith.constant 0.000000e+00 : f32
    %44 = vector.broadcast %cst_21 : f32 to vector<16x256xf32>
    %45 = arith.select %43, %21, %44 : vector<16x256xi1>, vector<16x256xf32>
    %cst_22 = arith.constant dense<0.000000e+00> : vector<16xf32>
    %46 = vector.multi_reduction <add>, %45, %cst_22 [1] : vector<16x256xf32> to vector<16xf32>
    %47 = vector.shape_cast %46 : vector<16xf32> to vector<16x1xf32>
    %48 = arith.subf %40, %47 : vector<16x1xf32>
    %49 = arith.mulf %48, %29 : vector<16x1xf32>
    %50 = vector.shape_cast %49 : vector<16x1xf32> to vector<1x16x1xf32>
    %cst_23 = arith.constant dense<0.000000e+00> : vector<1xf32>
    %51 = vector.multi_reduction <add>, %50, %cst_23 [1, 2] : vector<1x16x1xf32> to vector<1xf32>
    %52 = vector.shape_cast %51 : vector<1xf32> to vector<1x1x1xf32>
    %53 = vector.extract %52[0, 0, 0] : f32 from vector<1x1x1xf32>
    %54 = vector.shape_cast %29 : vector<16x1xf32> to vector<1x16x1xf32>
    %cst_24 = arith.constant dense<0.000000e+00> : vector<1xf32>
    %55 = vector.multi_reduction <add>, %54, %cst_24 [1, 2] : vector<1x16x1xf32> to vector<1xf32>
    %56 = vector.shape_cast %55 : vector<1xf32> to vector<1x1x1xf32>
    %57 = vector.extract %56[0, 0, 0] : f32 from vector<1x1x1xf32>
    %58 = tpu.iota {dimensions = array<i32: 1>} : vector<1x8x128xi32>
    %59 = tpu.iota {dimensions = array<i32: 2>} : vector<1x8x128xi32>
    %c0_i32_25 = arith.constant 0 : i32
    %60 = vector.broadcast %c0_i32_25 : i32 to vector<1x8x128xi32>
    %61 = arith.cmpi eq, %58, %60 : vector<1x8x128xi32>
    %c0_i32_26 = arith.constant 0 : i32
    %62 = vector.broadcast %c0_i32_26 : i32 to vector<1x8x128xi32>
    %63 = arith.cmpi eq, %59, %62 : vector<1x8x128xi32>
    %64 = arith.andi %61, %63 : vector<1x8x128xi1>
    %c0_i32_27 = arith.constant 0 : i32
    %65 = vector.broadcast %c0_i32_27 : i32 to vector<1x8x128xi32>
    %66 = arith.cmpi eq, %58, %65 : vector<1x8x128xi32>
    %c1_i32 = arith.constant 1 : i32
    %67 = vector.broadcast %c1_i32 : i32 to vector<1x8x128xi32>
    %68 = arith.cmpi eq, %59, %67 : vector<1x8x128xi32>
    %69 = arith.andi %66, %68 : vector<1x8x128xi1>
    %cst_28 = arith.constant 0.000000e+00 : f32
    %70 = vector.broadcast %57 : f32 to vector<1x8x128xf32>
    %71 = vector.broadcast %cst_28 : f32 to vector<1x8x128xf32>
    %72 = arith.select %69, %70, %71 : vector<1x8x128xi1>, vector<1x8x128xf32>
    %73 = vector.broadcast %53 : f32 to vector<1x8x128xf32>
    %74 = arith.select %64, %73, %72 : vector<1x8x128xi1>, vector<1x8x128xf32>
    %c0_29 = arith.constant 0 : index
    %c0_30 = arith.constant 0 : index
    %c0_31 = arith.constant 0 : index
    %75 = vector.load %arg8[%c0_29, %c0_30, %c0_31] : memref<1x8x128xf32, #tpu.memory_space<vmem>>, vector<1x8x128xf32>
    tpu.vector_store %arg8[%c0_29, %c0_30, %c0_31], %74 {strides = array<i32>} : memref<1x8x128xf32, #tpu.memory_space<vmem>>, vector<1x8x128xf32>,
    return
  }
  func.func @transform_0(%arg0: i32) -> (i32, i32) {
    %c0_i32 = arith.constant 0 : i32
    %c0_i32_0 = arith.constant 0 : i32
    return %arg0, %c0_i32 : i32, i32
  }
  func.func @transform_1(%arg0: i32) -> (i32, i32) {
    %c0_i32 = arith.constant 0 : i32
    %c0_i32_0 = arith.constant 0 : i32
    %c0_i32_1 = arith.constant 0 : i32
    return %c0_i32, %c0_i32_0 : i32, i32
  }
  func.func @transform_2(%arg0: i32) -> (i32, i32) {
    %c0_i32 = arith.constant 0 : i32
    %c0_i32_0 = arith.constant 0 : i32
    %c0_i32_1 = arith.constant 0 : i32
    return %c0_i32, %c0_i32_0 : i32, i32
  }
  func.func @transform_3(%arg0: i32) -> (i32, i32) {
    %c0_i32 = arith.constant 0 : i32
    %c0_i32_0 = arith.constant 0 : i32
    %c0_i32_1 = arith.constant 0 : i32
    return %c0_i32, %c0_i32_0 : i32, i32
  }
  func.func @transform_4(%arg0: i32) -> (i32, i32) {
    %c0_i32 = arith.constant 0 : i32
    %c0_i32_0 = arith.constant 0 : i32
    return %arg0, %c0_i32 : i32, i32
  }
  func.func @transform_5(%arg0: i32) -> (i32, i32) {
    %c0_i32 = arith.constant 0 : i32
    %c0_i32_0 = arith.constant 0 : i32
    return %arg0, %c0_i32 : i32, i32
  }
  func.func @transform_6(%arg0: i32) -> (i32, i32) {
    %c0_i32 = arith.constant 0 : i32
    %c0_i32_0 = arith.constant 0 : i32
    return %arg0, %c0_i32 : i32, i32
  }
  func.func @transform_7(%arg0: i32) -> (i32, i32, i32) {
    %c0_i32 = arith.constant 0 : i32
    %c0_i32_0 = arith.constant 0 : i32
    %c0_i32_1 = arith.constant 0 : i32
    return %arg0, %c0_i32, %c0_i32_0 : i32, i32, i32
  }
}

module attributes {stable_mosaic.version = 11 : i64} {
  func.func @_lm_forward_kernel(%arg0: i32, %arg1: memref<16x256xbf16, #tpu.memory_space<vmem>>, %arg2: memref<256x256xbf16, #tpu.memory_space<vmem>>, %arg3: memref<1x256xf32, #tpu.memory_space<vmem>>, %arg4: memref<256x256xbf16, #tpu.memory_space<vmem>>, %arg5: memref<16x1xf32, #tpu.memory_space<vmem>>, %arg6: memref<16x1xi32, #tpu.memory_space<vmem>>, %arg7: memref<16x256xf32, #tpu.memory_space<vmem>>, %arg8: memref<1x8x128xf32, #tpu.memory_space<vmem>>) attributes {dimension_semantics = [#tpu.dimension_semantics<parallel>], iteration_bounds = array<i64: 1>, scalar_prefetch = 0 : i64, scratch_operands = 0 : i64, tpu.core_type = #tpu.core_type<tc>, window_params = [{transform_indices = @transform_0, window_bounds = array<i64: 16, 256>}, {pipeline_mode = #tpu.pipeline_mode<synchronous>, transform_indices = @transform_1, window_bounds = array<i64: 256, 256>}, {pipeline_mode = #tpu.pipeline_mode<synchronous>, transform_indices = @transform_2, window_bounds = array<i64: 1, 256>}, {pipeline_mode = #tpu.pipeline_mode<synchronous>, transform_indices = @transform_3, window_bounds = array<i64: 256, 256>}, {transform_indices = @transform_4, window_bounds = array<i64: 16, 1>}, {transform_indices = @transform_5, window_bounds = array<i64: 16, 1>}, {transform_indices = @transform_6, window_bounds = array<i64: 16, 256>}, {transform_indices = @transform_7, window_bounds = array<i64: 1, 8, 128>}]} {
    %c0 = arith.constant 0 : index
    %c0_0 = arith.constant 0 : index
    %0 = vector.load %arg1[%c0, %c0_0] : memref<16x256xbf16, #tpu.memory_space<vmem>>, vector<16x256xbf16>
    %c0_1 = arith.constant 0 : index
    %c0_2 = arith.constant 0 : index
    %1 = vector.load %arg2[%c0_1, %c0_2] : memref<256x256xbf16, #tpu.memory_space<vmem>>, vector<256x256xbf16>
    %cst = arith.constant dense<0.000000e+00> : vector<16x256xf32>
    %2 = tpu.matmul %0, %1, %cst {dimension_numbers = #tpu.dot_dimension_numbers<[1], [0], [0], [1], [0, 0, 1, 1], [], []>} : vector<16x256xbf16>, vector<256x256xbf16>, vector<16x256xf32> -> vector<16x256xf32>
    %c0_3 = arith.constant 0 : index
    %c0_4 = arith.constant 0 : index
    %3 = vector.load %arg3[%c0_3, %c0_4] : memref<1x256xf32, #tpu.memory_space<vmem>>, vector<1x256xf32>
    %4 = vector.broadcast %3 : vector<1x256xf32> to vector<16x256xf32>
    %5 = arith.addf %2, %4 : vector<16x256xf32>
    %6 = arith.mulf %5, %5 : vector<16x256xf32>
    %7 = arith.mulf %5, %6 : vector<16x256xf32>
    %cst_5 = arith.constant 4.471500e-02 : f32
    %8 = vector.broadcast %cst_5 : f32 to vector<16x256xf32>
    %9 = arith.mulf %8, %7 : vector<16x256xf32>
    %10 = arith.addf %5, %9 : vector<16x256xf32>
    %cst_6 = arith.constant 0.797884583 : f32
    %11 = vector.broadcast %cst_6 : f32 to vector<16x256xf32>
    %12 = arith.mulf %11, %10 : vector<16x256xf32>
    %13 = math.tanh %12 : vector<16x256xf32>
    %cst_7 = arith.constant 1.000000e+00 : f32
    %14 = vector.broadcast %cst_7 : f32 to vector<16x256xf32>
    %15 = arith.addf %14, %13 : vector<16x256xf32>
    %cst_8 = arith.constant 5.000000e-01 : f32
    %16 = vector.broadcast %cst_8 : f32 to vector<16x256xf32>
    %17 = arith.mulf %16, %15 : vector<16x256xf32>
    %18 = arith.mulf %5, %17 : vector<16x256xf32>
    %19 = arith.truncf %18 : vector<16x256xf32> to vector<16x256xbf16>
    %c0_9 = arith.constant 0 : index
    %c0_10 = arith.constant 0 : index
    %20 = vector.load %arg4[%c0_9, %c0_10] : memref<256x256xbf16, #tpu.memory_space<vmem>>, vector<256x256xbf16>
    %cst_11 = arith.constant dense<0.000000e+00> : vector<16x256xf32>
    %21 = tpu.matmul %19, %20, %cst_11 {dimension_numbers = #tpu.dot_dimension_numbers<[1], [0], [0], [1], [0, 0, 1, 1], [], []>} : vector<16x256xbf16>, vector<256x256xbf16>, vector<16x256xf32> -> vector<16x256xf32>
    %c0_12 = arith.constant 0 : index
    %c0_13 = arith.constant 0 : index
    %22 = vector.load %arg7[%c0_12, %c0_13] : memref<16x256xf32, #tpu.memory_space<vmem>>, vector<16x256xf32>
    tpu.vector_store %arg7[%c0_12, %c0_13], %21 {strides = array<i32>} : memref<16x256xf32, #tpu.memory_space<vmem>>, vector<16x256xf32>,
    %c0_14 = arith.constant 0 : index
    %c0_15 = arith.constant 0 : index
    %23 = vector.load %arg6[%c0_14, %c0_15] : memref<16x1xi32, #tpu.memory_space<vmem>>, vector<16x1xi32>
    %c0_16 = arith.constant 0 : index
    %c0_17 = arith.constant 0 : index
    %24 = vector.load %arg5[%c0_16, %c0_17] : memref<16x1xf32, #tpu.memory_space<vmem>>, vector<16x1xf32>
    %c0_i32 = arith.constant 0 : i32
    %25 = vector.broadcast %c0_i32 : i32 to vector<16x1xi32>
    %26 = arith.cmpi sge, %23, %25 : vector<16x1xi32>
    %27 = arith.extui %26 : vector<16x1xi1> to vector<16x1xi32>
    %28 = arith.sitofp %27 : vector<16x1xi32> to vector<16x1xf32>
    %29 = arith.mulf %24, %28 : vector<16x1xf32>
    %c0_i32_18 = arith.constant 0 : i32
    %30 = vector.broadcast %c0_i32_18 : i32 to vector<16x1xi32>
    %31 = arith.maxsi %23, %30 : vector<16x1xi32>
    %cst_19 = arith.constant dense<0xFF800000> : vector<16xf32>
    %32 = vector.multi_reduction <maximumf>, %21, %cst_19 [1] : vector<16x256xf32> to vector<16xf32>
    %33 = vector.shape_cast %32 : vector<16xf32> to vector<16x1xf32>
    %34 = vector.broadcast %33 : vector<16x1xf32> to vector<16x256xf32>
    %35 = arith.subf %21, %34 : vector<16x256xf32>
    %36 = math.exp %35 : vector<16x256xf32>
    %cst_20 = arith.constant dense<0.000000e+00> : vector<16xf32>
    %37 = vector.multi_reduction <add>, %36, %cst_20 [1] : vector<16x256xf32> to vector<16xf32>
    %38 = vector.shape_cast %37 : vector<16xf32> to vector<16x1xf32>
    %39 = math.log %38 : vector<16x1xf32>
    %40 = arith.addf %33, %39 : vector<16x1xf32>
    %41 = tpu.iota {dimensions = array<i32: 1>} : vector<16x256xi32>
    %42 = vector.broadcast %31 : vector<16x1xi32> to vector<16x256xi32>
    %43 = arith.cmpi eq, %41, %42 : vector<16x256xi32>
    %cst_21 = arith.constant 0.000000e+00 : f32
    %44 = vector.broadcast %cst_21 : f32 to vector<16x256xf32>
    %45 = arith.select %43, %21, %44 : vector<16x256xi1>, vector<16x256xf32>
    %cst_22 = arith.constant dense<0.000000e+00> : vector<16xf32>
    %46 = vector.multi_reduction <add>, %45, %cst_22 [1] : vector<16x256xf32> to vector<16xf32>
    %47 = vector.shape_cast %46 : vector<16xf32> to vector<16x1xf32>
    %48 = arith.subf %40, %47 : vector<16x1xf32>
    %49 = arith.mulf %48, %29 : vector<16x1xf32>
    %50 = vector.shape_cast %49 : vector<16x1xf32> to vector<1x16x1xf32>
    %cst_23 = arith.constant dense<0.000000e+00> : vector<1xf32>
    %51 = vector.multi_reduction <add>, %50, %cst_23 [1, 2] : vector<1x16x1xf32> to vector<1xf32>
    %52 = vector.shape_cast %51 : vector<1xf32> to vector<1x1x1xf32>
    %53 = vector.extract %52[0, 0, 0] : f32 from vector<1x1x1xf32>
    %54 = vector.shape_cast %29 : vector<16x1xf32> to vector<1x16x1xf32>
    %cst_24 = arith.constant dense<0.000000e+00> : vector<1xf32>
    %55 = vector.multi_reduction <add>, %54, %cst_24 [1, 2] : vector<1x16x1xf32> to vector<1xf32>
    %56 = vector.shape_cast %55 : vector<1xf32> to vector<1x1x1xf32>
    %57 = vector.extract %56[0, 0, 0] : f32 from vector<1x1x1xf32>
    %58 = tpu.iota {dimensions = array<i32: 1>} : vector<1x8x128xi32>
    %59 = tpu.iota {dimensions = array<i32: 2>} : vector<1x8x128xi32>
    %c0_i32_25 = arith.constant 0 : i32
    %60 = vector.broadcast %c0_i32_25 : i32 to vector<1x8x128xi32>
    %61 = arith.cmpi eq, %58, %60 : vector<1x8x128xi32>
    %c0_i32_26 = arith.constant 0 : i32
    %62 = vector.broadcast %c0_i32_26 : i32 to vector<1x8x128xi32>
    %63 = arith.cmpi eq, %59, %62 : vector<1x8x128xi32>
    %64 = arith.andi %61, %63 : vector<1x8x128xi1>
    %c0_i32_27 = arith.constant 0 : i32
    %65 = vector.broadcast %c0_i32_27 : i32 to vector<1x8x128xi32>
    %66 = arith.cmpi eq, %58, %65 : vector<1x8x128xi32>
    %c1_i32 = arith.constant 1 : i32
    %67 = vector.broadcast %c1_i32 : i32 to vector<1x8x128xi32>
    %68 = arith.cmpi eq, %59, %67 : vector<1x8x128xi32>
    %69 = arith.andi %66, %68 : vector<1x8x128xi1>
    %cst_28 = arith.constant 0.000000e+00 : f32
    %70 = vector.broadcast %57 : f32 to vector<1x8x128xf32>
    %71 = vector.broadcast %cst_28 : f32 to vector<1x8x128xf32>
    %72 = arith.select %69, %70, %71 : vector<1x8x128xi1>, vector<1x8x128xf32>
    %73 = vector.broadcast %53 : f32 to vector<1x8x128xf32>
    %74 = arith.select %64, %73, %72 : vector<1x8x128xi1>, vector<1x8x128xf32>
    %c0_29 = arith.constant 0 : index
    %c0_30 = arith.constant 0 : index
    %c0_31 = arith.constant 0 : index
    %75 = vector.load %arg8[%c0_29, %c0_30, %c0_31] : memref<1x8x128xf32, #tpu.memory_space<vmem>>, vector<1x8x128xf32>
    tpu.vector_store %arg8[%c0_29, %c0_30, %c0_31], %74 {strides = array<i32>} : memref<1x8x128xf32, #tpu.memory_space<vmem>>, vector<1x8x128xf32>,
    return
  }
  func.func @transform_0(%arg0: i32) -> (i32, i32) {
    %c0_i32 = arith.constant 0 : i32
    %c0_i32_0 = arith.constant 0 : i32
    return %arg0, %c0_i32 : i32, i32
  }
  func.func @transform_1(%arg0: i32) -> (i32, i32) {
    %c0_i32 = arith.constant 0 : i32
    %c0_i32_0 = arith.constant 0 : i32
    %c0_i32_1 = arith.constant 0 : i32
    return %c0_i32, %c0_i32_0 : i32, i32
  }
  func.func @transform_2(%arg0: i32) -> (i32, i32) {
    %c0_i32 = arith.constant 0 : i32
    %c0_i32_0 = arith.constant 0 : i32
    %c0_i32_1 = arith.constant 0 : i32
    return %c0_i32, %c0_i32_0 : i32, i32
  }
  func.func @transform_3(%arg0: i32) -> (i32, i32) {
    %c0_i32 = arith.constant 0 : i32
    %c0_i32_0 = arith.constant 0 : i32
    %c0_i32_1 = arith.constant 0 : i32
    return %c0_i32, %c0_i32_0 : i32, i32
  }
  func.func @transform_4(%arg0: i32) -> (i32, i32) {
    %c0_i32 = arith.constant 0 : i32
    %c0_i32_0 = arith.constant 0 : i32
    return %arg0, %c0_i32 : i32, i32
  }
  func.func @transform_5(%arg0: i32) -> (i32, i32) {
    %c0_i32 = arith.constant 0 : i32
    %c0_i32_0 = arith.constant 0 : i32
    return %arg0, %c0_i32 : i32, i32
  }
  func.func @transform_6(%arg0: i32) -> (i32, i32) {
    %c0_i32 = arith.constant 0 : i32
    %c0_i32_0 = arith.constant 0 : i32
    return %arg0, %c0_i32 : i32, i32
  }
  func.func @transform_7(%arg0: i32) -> (i32, i32, i32) {
    %c0_i32 = arith.constant 0 : i32
    %c0_i32_0 = arith.constant 0 : i32
    %c0_i32_1 = arith.constant 0 : i32
    return %arg0, %c0_i32, %c0_i32_0 : i32, i32, i32
  }
}

</mosaic_0001>

<bundles_post_ra>
// kernel: distillation_forward.3
= control target key start
LH: loop header
LB: loop body
LE: loop exit
PB: predicated region body
PF: predicated region fallthrough
CT: control target
= control target key end

     0   :  { %v581_v1 = vmov 0.0   ;;  %vm582_vm0 = vmmov 0   ;;  %s766_s0 = inlined_call_operand.vmem [shape: bf16[16,128], index: 0, kind: input, shape index: {}]   ;;  %s767_s1 = inlined_call_operand.vmem [shape: bf16[128,128], index: 1, kind: input, shape index: {}]   ;;  %s768_s2 = inlined_call_operand.vmem [shape: f32[1,128], index: 2, kind: input, shape index: {}]   ;;  %s769_s3 = inlined_call_operand.vmem [shape: bf16[128,256], index: 3, kind: input, shape index: {}]   ;;  %s770_s4 = inlined_call_operand.vmem [shape: f32[16,1], index: 4, kind: input, shape index: {}]   ;;  %s771_s5 = inlined_call_operand.vmem [shape: s32[16,1], index: 5, kind: input, shape index: {}]   ;;  %s772_s6 = inlined_call_operand.hbm [shape: f32[16,256], index: 6, kind: output, shape index: {0}]   ;;  %s773_s7 = inlined_call_operand.vmem [shape: f32[1,8,128], index: 7, kind: output, shape index: {1}]  }
   0x1   :  { %v508_v0 = vld [vmem:[%s767_s1] sm:$0xff]   ;;  %476 = vmatprep.subr.bf16.mxu0 %v581_v1  ;;  %v509_v2 = vld [vmem:[%s767_s1 + $0x8] sm:$0xff]   ;;  %492 = vmatprep.mubr.msk.bf16.mxu0 %vm582_vm0, %v581_v1  ;;  %v510_v3 = vld [vmem:[%s767_s1 + $0x10] sm:$0xff]  }
   0x2   :  { %477 = vmatpush3.bf16.msra.mxu0 %v508_v0  ;;  %v511_v4 = vld [vmem:[%s767_s1 + $0x18] sm:$0xff]   ;;  %v512_v5 = vld [vmem:[%s767_s1 + $0x20] sm:$0xff]  }
   0x3   :  { %478 = vmatprep.subr.bf16.mxu0 %v581_v1 }
   0x6   :  { %479 = vmatpush3.bf16.msra.mxu0 %v509_v2 }
   0x7   :  { %480 = vmatprep.subr.bf16.mxu0 %v581_v1 }
   0xa   :  { %481 = vmatpush3.bf16.msra.mxu0 %v510_v3 }
   0xb   :  { %482 = vmatprep.subr.bf16.mxu0 %v581_v1 }
   0xe   :  { %483 = vmatpush3.bf16.msra.mxu0 %v511_v4 }
   0xf   :  { %13 = vsyncpa [#allocation3], 0  ;;  %484 = vmatprep.subr.bf16.mxu0 %v581_v1  ;;  %v513_v6 = vld [vmem:[%s767_s1 + $0x28] sm:$0xff]   ;;  %v514_v7 = vld [vmem:[%s767_s1 + $0x30] sm:$0xff]   ;;  %v583_v21 = vmov 0   ;;  %v355_v57 = vlaneseq  ;;  %vm382_vm9 = vcmask 7168  }
  0x10   :  { %v515_v8 = vld [vmem:[%s767_s1 + $0x38] sm:$0xff]   ;;  %v516_v9 = vld [vmem:[%s766_s0] sm:$0xff]   ;;  %294 = vmatprep.mubr.bf16.mxu1 %v583_v21  ;;  %506 = vset.pattern.permute.xlu1 %v583_v21  ;;  %v719_v28 = vld [vmem:[%s771_s5 + $0x8] sm:$0xff] }
  0x11   :  { %v517_v10 = vld [vmem:[%s769_s3 + $0x4] ss:$8 sps:$4 sm:$0xff]   ;;  %v519_v11 = vld [vmem:[%s769_s3] ss:$8 sps:$4 sm:$0xff]   ;;  %v520_v12 = vld [vmem:[%s769_s3 + $0x14] ss:$8 sps:$4 sm:$0xff]   ;;  %507 = vset.pattern.permute.xlu0 %v583_v21 }
  0x12   :  { %485 = vmatpush3.bf16.msra.mxu0 %v512_v5  ;;  %262 = vmatprep.subr.bf16.mxu1 %v517_v10  ;;  %v522_v13 = vld [vmem:[%s769_s3 + $0x10] ss:$8 sps:$4 sm:$0xff]   ;;  %v523_v14 = vld [vmem:[%s769_s3 + $0x24] ss:$8 sps:$4 sm:$0xff]   ;;  %v525_v15 = vld [vmem:[%s769_s3 + $0x20] ss:$8 sps:$4 sm:$0xff]  }
  0x13   :  { %486 = vmatprep.subr.bf16.mxu0 %v581_v1  ;;  %263 = vmatpush1.bf16.msra.mxu1 %v519_v11  ;;  %v526_v16 = vld [vmem:[%s769_s3 + $0x34] ss:$8 sps:$4 sm:$0xff]   ;;  %v528_v17 = vld [vmem:[%s769_s3 + $0x30] ss:$8 sps:$4 sm:$0xff]   ;;  %v529_v18 = vld [vmem:[%s769_s3 + $0x44] ss:$8 sps:$4 sm:$0xff]  }
  0x14   :  { %264 = vmatprep.subr.bf16.mxu1 %v520_v12  ;;  %v531_v19 = vld [vmem:[%s769_s3 + $0x40] ss:$8 sps:$4 sm:$0xff]   ;;  %v532_v20 = vld [vmem:[%s769_s3 + $0x54] ss:$8 sps:$4 sm:$0xff]   ;;  %v534_v22 = vld [vmem:[%s769_s3 + $0x50] ss:$8 sps:$4 sm:$0xff]  }
  0x15   :  { %v535_v23 = vld [vmem:[%s769_s3 + $0x64] ss:$8 sps:$4 sm:$0xff]   ;;  %v537_v24 = vld [vmem:[%s769_s3 + $0x60] ss:$8 sps:$4 sm:$0xff]   ;;  %v538_v25 = vld [vmem:[%s769_s3 + $0x74] ss:$8 sps:$4 sm:$0xff]  }
  0x16   :  { %487 = vmatpush3.bf16.msra.mxu0 %v513_v6  ;;  %v540_v26 = vld [vmem:[%s769_s3 + $0x70] ss:$8 sps:$4 sm:$0xff]   ;;  %v714_v27 = vld [vmem:[%s771_s5] sm:$0xff]  ;;  %vm323_vm2 = vcmp.gt.s32.totalorder %v719_v28, 0  ;;  %v729_v58 = vand.u32 127, %v355_v57  ;;  %vm314_vm8 = vcmp.ge.s32.totalorder %v719_v28, 0 }
  0x17   :  { %488 = vmatprep.subr.bf16.mxu0 %v581_v1  ;;  %265 = vmatpush1.bf16.msra.mxu1 %v522_v13  ;;  %vm321_vm1 = vcmp.gt.s32.totalorder %v714_v27, 0  ;;  %v324_v30 = vsel %vm323_vm2, %v719_v28, 0  ;;  %v439_v31 = vld [vmem:[%s768_s2] ss:$0 sm:$0xff]  ;;  %vm313_vm7 = vcmp.ge.s32.totalorder %v714_v27, 0 }
  0x18   :  { %266 = vmatprep.subr.bf16.mxu1 %v523_v14  ;;  %v322_v29 = vsel %vm321_vm1, %v714_v27, 0  ;;  %v357_v60 = vadd.s32 128, %v729_v58 }
  0x19   :  { %359 = vperm.xlu1 %506, %v322_v29   ;;  %v311_v29 = vld [vmem:[%s770_s4] sm:$0xff] }
  0x1a   :  { %489 = vmatpush3.bf16.msra.mxu0 %v514_v7 }
  0x1b   :  { %490 = vmatprep.subr.bf16.mxu0 %v581_v1  ;;  %267 = vmatpush1.bf16.msra.mxu1 %v525_v15 }
  0x1c   :  { %268 = vmatprep.subr.bf16.mxu1 %v526_v16 }
  0x1d   :  { %362 = vperm.xlu1 %506, %v324_v30   ;;  %v465_v30 = vsel %vm313_vm7, 1.0, %v581_v1 }
  0x1e   :  { %491 = vmatpush3.bf16.msra.mxu0 %v515_v8 }
  0x1f   :  { %269 = vmatpush1.bf16.msra.mxu1 %v528_v17 }
  0x20   :  { %270 = vmatprep.subr.bf16.mxu1 %v529_v18 }
  0x21   :  { %493 = vmatmul.mubr.bf16.vlgmr.msra.gmra.mrb[0].mxu0 %v516_v9 }
  0x23   :  { %271 = vmatpush1.bf16.msra.mxu1 %v531_v19 }
  0x24   :  { %272 = vmatprep.subr.bf16.mxu1 %v532_v20 }
  0x27   :  { %273 = vmatpush1.bf16.msra.mxu1 %v534_v22 }
  0x28   :  { %274 = vmatprep.subr.bf16.mxu1 %v535_v23 }
  0x2b   :  { %275 = vmatpush1.bf16.msra.mxu1 %v537_v24 }
  0x2c   :  { %276 = vmatprep.subr.bf16.mxu1 %v538_v25 }
  0x2f   :  { %277 = vmatpush1.bf16.msra.mxu1 %v540_v26 }
  0x98   :  { %v360_v59 = vpop.permute.xlu1 %359 }
  0x99   :  { %vm364_vm3 = vcmp.eq.s32.totalorder %v729_v58, %v360_v59  ;;  %vm365_vm4 = vcmp.eq.s32.totalorder %v357_v60, %v360_v59 }
  0x9c   :  { %v363_v61 = vpop.permute.xlu1 %362 }
  0x9d   :  { %vm366_vm5 = vcmp.eq.s32.totalorder %v729_v58, %v363_v61  ;;  %vm367_vm6 = vcmp.eq.s32.totalorder %v357_v60, %v363_v61 }
  0xf4   :  { %v140_v32 = vpop.f32.mrb[0].mxu0 }
  0xf5   :  { %v141_v33 = vadd.f32 %v439_v31, %v140_v32  ;;  %v494_v34 = vpop.f32.mrb[1].mxu0  ;;  %v466_v32 = vsel %vm314_vm8, 1.0, %v581_v1 }
  0xf6   :  { %v143_v35 = vpop.f32.mrb[2].mxu0 }
  0xf7   :  { %v147_v36 = vmul.f32 %v141_v33, %v141_v33  ;;  %v144_v37 = vadd.f32 %v439_v31, %v143_v35  ;;  %v495_v38 = vpop.f32.mrb[3].mxu0  ;;  %v312_v31 = vld [vmem:[%s770_s4 + $0x8] sm:$0xff]  ;;  %s584_s4 = smov [#allocation2]  }
  0xf8   :  { %v320_v34 = vmul.f32 %v466_v32, %v312_v31  ;;  %s424_s8 = sshll.u32 %s584_s4, 4  ;;  %s425_s8 = int_to_ptr.vmem [resolvable:$true] %s424_s8 }
  0xf9   :  { %v149_v39 = vmul.f32 %v147_v36, %v141_v33  ;;  %v148_v40 = vmul.f32 %v144_v37, %v144_v37  ;;  %s557_s9 = scalar_lea.vmem %s425_s8, 512  ;;  %p562_p1 = scmp.lt.s32.totalorder %s425_s8, %s425_s8 }
  0xfa   :  { %v396_v27 = vsel %vm382_vm9, %v320_v34, 0.0  ;;  %p558_p0 = scmp.ne.s32.totalorder %s425_s8, %s557_s9  ;;  %p563_p2 = scmp.lt.s32.totalorder %s557_s9, %s557_s9 }
  0xfb   :  { %v151_v41 = vmul.f32 0.044715, %v149_v39  ;;  %v150_v42 = vmul.f32 %v148_v40, %v144_v37 }
  0xfc   :  { %p564_p3 = por %p563_p2, %p562_p1 }
  0xfd   :  { %v153_v43 = vadd.f32 %v151_v41, %v141_v33  ;;  %v152_v44 = vmul.f32 0.044715, %v150_v42 }
  0xfe   :  { %p565_p4 = pnand %p564_p3, %p558_p0 }
  0xff   :  { %v155_v45 = vmul.f32 0.7978846, %v153_v43  ;;  %v154_v46 = vadd.f32 %v152_v44, %v144_v37 }
 0x101   :  { %541 = vtanh.f32 %v155_v45  ;;  %v156_v47 = vmul.f32 0.7978846, %v154_v46 }
 0x103   :  { %543 = vtanh.f32 %v156_v47 }
 0x10b   :  { %v542_v48 = vpop.eup %541 }
 0x10c   :  { %v159_v49 = vadd.f32 1.0, %v542_v48 }
 0x10d   :  { %v544_v50 = vpop.eup %543 }
 0x10e   :  { %v160_v51 = vadd.f32 1.0, %v544_v50  ;;  %v161_v52 = vmul.f32 0.5, %v159_v49 }
 0x110   :  { %v162_v53 = vmul.f32 0.5, %v160_v51  ;;  %v163_v54 = vmul.f32 %v161_v52, %v141_v33  ;;  %v319_v33 = vmul.f32 %v465_v30, %v311_v29 }
 0x112   :  { %v164_v55 = vmul.f32 %v162_v53, %v144_v37  ;;  %v395_v35 = vsel %vm382_vm9, %v319_v33, 0.0 }
 0x113   :  { %v397_v28 = vadd.f32 %v396_v27, %v395_v35 }
 0x114   :  { %v165_v56 = vpack.c.bf16 %v164_v55, %v163_v54 }
 0x116   :  { %295 = vmatmul.mubr.bf16.vlgmr.msra.gmra.mrb[0].mxu1 %v165_v56 }
 0x1e9   :  { %v296_v62 = vpop.f32.mrb[0].mxu1 }
 0x1ea   :  { %305 = vst [vmem:[#allocation2] sm:$0xff] %v296_v62  ;;  %v298_v63 = vpop.f32.mrb[1].mxu1  ;;  %v368_v0 = vsel %vm364_vm3, %v296_v62, 0.0 }
 0x1eb   :  { %306 = vst [vmem:[#allocation2 + $0x8] sm:$0xff] %v298_v63  ;;  %v300_v2 = vpop.f32.mrb[2].mxu1  ;;  %v325_v3 = vmax.f32 %v296_v62, %v298_v63  ;;  %v369_v4 = vsel %vm365_vm4, %v298_v63, 0.0 }
 0x1ec   :  { %307 = vst [vmem:[#allocation2 + $0x10] sm:$0xff] %v300_v2  ;;  %v302_v5 = vpop.f32.mrb[3].mxu1  ;;  %v372_v6 = vadd.f32 %v369_v4, %v368_v0  ;;  %v370_v7 = vsel %vm366_vm5, %v300_v2, 0.0 }
 0x1ed   :  { %308 = vst [vmem:[#allocation2 + $0x18] sm:$0xff] %v302_v5  ;;  %326 = vmax.xlane.f32.xlu0 %v325_v3  ;;  %v328_v8 = vmax.f32 %v300_v2, %v302_v5  ;;  %v371_v9 = vsel %vm367_vm6, %v302_v5, 0.0 }
 0x1ee   :  { %v375_v10 = vadd.f32 %v371_v9, %v370_v7 }
 0x1f1   :  { %329 = vmax.xlane.f32.xlu0 %v328_v8 }
 0x27a   :  { %v327_v11 = vpop.xlane.xlu0 %326 }
 0x27b   :  { %v331_v12 = vsub.f32 %v296_v62, %v327_v11  ;;  %v332_v13 = vsub.f32 %v298_v63, %v327_v11 }
 0x27d   :  { %v335_v14 = vmul.f32 1.442695, %v331_v12  ;;  %v337_v15 = vmul.f32 1.442695, %v332_v13 }
 0x27e   :  { %v330_v16 = vpop.xlane.xlu0 %329 }
 0x27f   :  { %545 = vpow2.f32 %v335_v14  ;;  %v333_v17 = vsub.f32 %v300_v2, %v330_v16  ;;  %v334_v18 = vsub.f32 %v302_v5, %v330_v16 }
 0x280   :  { %547 = vpow2.f32 %v337_v15 }
 0x281   :  { %v339_v19 = vmul.f32 1.442695, %v333_v17  ;;  %v341_v20 = vmul.f32 1.442695, %v334_v18 }
 0x283   :  { %549 = vpow2.f32 %v339_v19 }
 0x284   :  { %551 = vpow2.f32 %v341_v20 }
 0x289   :  { %v546_v21 = vpop.eup %545 }
 0x28a   :  { %v548_v22 = vpop.eup %547 }
 0x28b   :  { %v343_v23 = vadd.f32 %v548_v22, %v546_v21 }
 0x28d   :  { %v550_v24 = vpop.eup %549  ;;  %344 = vadd.xlane.f32.xlu0 %v343_v23 }
 0x28e   :  { %v552_v25 = vpop.eup %551 }
 0x28f   :  { %v346_v26 = vadd.f32 %v552_v25, %v550_v24 }
 0x291   :  { %373 = vadd.xlane.f32.xlu0 %v372_v6  ;;  %347 = vadd.xlane.f32.xlu1 %v346_v26 }
 0x295   :  { %376 = vadd.xlane.f32.xlu0 %v375_v10 }
 0x31a   :  { %v345_v36 = vpop.xlane.xlu0 %344 }
 0x31b   :  { %553 = vlog2.f32 %v345_v36 }
 0x31e   :  { %v348_v37 = vpop.xlane.xlu1 %347  ;;  %v374_v40 = vpop.xlane.xlu0 %373 }
 0x31f   :  { %555 = vlog2.f32 %v348_v37 }
 0x322   :  { %v377_v45 = vpop.xlane.xlu0 %376 }
 0x325   :  { %v554_v38 = vpop.eup %553 }
 0x326   :  { %v350_v39 = vmul.f32 0.6931472, %v554_v38 }
 0x328   :  { %v353_v41 = vadd.f32 %v350_v39, %v327_v11 }
 0x329   :  { %v556_v42 = vpop.eup %555 }
 0x32a   :  { %v352_v43 = vmul.f32 0.6931472, %v556_v42  ;;  %v378_v44 = vsub.f32 %v353_v41, %v374_v40 }
 0x32c   :  { %v354_v1 = vadd.f32 %v352_v43, %v330_v16  ;;  %v380_v46 = vmul.f32 %v378_v44, %v319_v33 }
 0x32e   :  { %v379_v47 = vsub.f32 %v354_v1, %v377_v45  ;;  %v383_v49 = vsel %vm382_vm9, %v380_v46, 0.0 }
 0x330   :  { %v381_v48 = vmul.f32 %v379_v47, %v320_v34 }
 0x332   :  { %v384_v50 = vsel %vm382_vm9, %v381_v48, 0.0 }
 0x333   :  { %v385_v51 = vadd.f32 %v384_v50, %v383_v49 }
 0x335   :  { %386 = vadd.xlane.f32.xlu0 %v385_v51 }
 0x339   :  { %398 = vadd.xlane.f32.xlu0 %v397_v28 }
 0x33a   :  { %568 = shalt.err (!%p565_p4)
}
 0x33b   :  { %s569_s12 = scalar_lea.hbm %s772_s6, 512 }
 0x33c   :  { %p570_p5 = scmp.ne.s32.totalorder %s772_s6, %s569_s12  ;;  %p573_p6 = scmp.lt.u32.totalorder %s569_s12, %s772_s6 }
 0x33e   :  { %p575_p7 = pnand %p573_p6, %p570_p5 }
 0x340   :  { %578 = shalt.err (!%p575_p7)
}
 0x341   :  { %s585_s17 = smov 256   ;;  %s586_s18 = smov 16   ;;  %v408_v5 = vshrl.u32 %v355_v57, 7  ;;  %vm412_vm11 = vcmp.eq.s32.totalorder %v729_v58, 1  ;;  %vm410_vm12 = vcmp.eq.s32.totalorder %v729_v58, 0 }
 0x342   :  { %430 = dma.vmem_to_hbm [thread:$0]  %s425_s8, 512, %s772_s6, [#allocation3], %s585_s17, %s585_s17, %s586_s18  }
 0x343   :  { %vm409_vm10 = vcmp.eq.s32.totalorder %v408_v5, 0 }
 0x344   :  { %vm413_vm13 = vmand %vm409_vm10, %vm412_vm11 }
 0x345   :  { %vm411_vm14 = vmand %vm409_vm10, %vm410_vm12 }
 0x3c2   :  { %v387_v52 = vpop.xlane.xlu0 %386 }
 0x3c3   :  { %v388_v53 = vrot.slane %v387_v52, 4 }
 0x3c5   :  { %v389_v54 = vadd.f32 %v388_v53, %v387_v52 }
 0x3c6   :  { %v399_v55 = vpop.xlane.xlu0 %398 }
 0x3c7   :  { %v390_v56 = vrot.slane %v389_v54, 2  ;;  %v400_v59 = vrot.slane %v399_v55, 4 }
 0x3c9   :  { %v401_v60 = vadd.f32 %v400_v59, %v399_v55  ;;  %v391_v61 = vadd.f32 %v390_v56, %v389_v54 }
 0x3cb   :  { %v402_v62 = vrot.slane %v401_v60, 2  ;;  %v392_v63 = vrot.slane %v391_v61, 1 }
 0x3cd   :  { %v403_v0 = vadd.f32 %v402_v62, %v401_v60  ;;  %v393_v2 = vadd.f32 %v392_v63, %v391_v61 }
 0x3cf   :  { %496 = vpush %v393_v2  ;;  %v404_v3 = vrot.slane %v403_v0, 1 }
 0x3d1   :  { %v405_v4 = vadd.f32 %v404_v3, %v403_v0 }
 0x3d3   :  { %498 = vpush %v405_v4 }
 0x400   :  { %s497_s6 = spop %496 }
 0x401   :  { %v416_v7 = vstv %s497_s6 }
 0x404   :  { %s499_s21 = spop %498 }
 0x405   :  { %v414_v6 = vstv %s499_s21 }
 0x406   :  { %v415_v8 = vsel %vm413_vm13, %v414_v6, 0.0 }
 0x407   :  { %v417_v9 = vsel %vm411_vm14, %v416_v7, %v415_v8 }
 0x408   :  { %418 = vst [vmem:[%s773_s7] sm:$0xff] %v417_v9 }
 0x409   :  { %579 = dma.done.wait [#allocation3], 512  }
 0x40a   :  { %580 = vsyncadd [#allocation3], 4294966784 }
 0x40b   :  { %438 = vsyncpa [#allocation3], 1 }

// kernel: distillation_forward.2
= control target key start
LH: loop header
LB: loop body
LE: loop exit
PB: predicated region body
PF: predicated region fallthrough
CT: control target
= control target key end

     0   :  { %s1213_s0 = inlined_call_operand.vmem [shape: bf16[16,256], index: 0, kind: input, shape index: {}]   ;;  %s1214_s1 = inlined_call_operand.vmem [shape: bf16[256,256], index: 1, kind: input, shape index: {}]   ;;  %s1215_s2 = inlined_call_operand.vmem [shape: f32[1,256], index: 2, kind: input, shape index: {}]   ;;  %s1216_s3 = inlined_call_operand.vmem [shape: bf16[256,256], index: 3, kind: input, shape index: {}]   ;;  %s1217_s4 = inlined_call_operand.vmem [shape: f32[16,1], index: 4, kind: input, shape index: {}]   ;;  %s1218_s5 = inlined_call_operand.vmem [shape: s32[16,1], index: 5, kind: input, shape index: {}]   ;;  %s1219_s6 = inlined_call_operand.hbm [shape: f32[16,256], index: 6, kind: output, shape index: {0}]   ;;  %s1220_s7 = inlined_call_operand.vmem [shape: f32[1,8,128], index: 7, kind: output, shape index: {1}]  }
   0x1   :  { %v771_v0 = vld [vmem:[%s1214_s1 + $0x4] ss:$8 sps:$4 sm:$0xff]   ;;  %v773_v1 = vld [vmem:[%s1214_s1] ss:$8 sps:$4 sm:$0xff]   ;;  %v774_v2 = vld [vmem:[%s1214_s1 + $0x14] ss:$8 sps:$4 sm:$0xff]  }
   0x2   :  { %242 = vmatprep.subr.bf16.mxu0 %v771_v0  ;;  %v776_v3 = vld [vmem:[%s1214_s1 + $0x10] ss:$8 sps:$4 sm:$0xff]   ;;  %v777_v4 = vld [vmem:[%s1214_s1 + $0x24] ss:$8 sps:$4 sm:$0xff]   ;;  %v779_v5 = vld [vmem:[%s1214_s1 + $0x20] ss:$8 sps:$4 sm:$0xff]  }
   0x3   :  { %243 = vmatpush1.bf16.msra.mxu0 %v773_v1  ;;  %v780_v6 = vld [vmem:[%s1214_s1 + $0x34] ss:$8 sps:$4 sm:$0xff]   ;;  %v782_v7 = vld [vmem:[%s1214_s1 + $0x30] ss:$8 sps:$4 sm:$0xff]   ;;  %v783_v8 = vld [vmem:[%s1214_s1 + $0x44] ss:$8 sps:$4 sm:$0xff]  }
   0x4   :  { %244 = vmatprep.subr.bf16.mxu0 %v774_v2  ;;  %v785_v9 = vld [vmem:[%s1214_s1 + $0x40] ss:$8 sps:$4 sm:$0xff]   ;;  %v786_v10 = vld [vmem:[%s1214_s1 + $0x54] ss:$8 sps:$4 sm:$0xff]   ;;  %v788_v11 = vld [vmem:[%s1214_s1 + $0x50] ss:$8 sps:$4 sm:$0xff]  }
   0x5   :  { %v789_v12 = vld [vmem:[%s1214_s1 + $0x64] ss:$8 sps:$4 sm:$0xff]   ;;  %v791_v13 = vld [vmem:[%s1214_s1 + $0x60] ss:$8 sps:$4 sm:$0xff]   ;;  %v792_v14 = vld [vmem:[%s1214_s1 + $0x74] ss:$8 sps:$4 sm:$0xff]  }
   0x6   :  { %v821_v15 = vld [vmem:[%s1213_s0 + $0x4] ss:$8 sps:$4 sm:$0xff]   ;;  %v824_v17 = vld [vmem:[%s1216_s3] ss:$8 sps:$4 sm:$0xff]   ;;  %v825_v18 = vld [vmem:[%s1216_s3 + $0x14] ss:$8 sps:$4 sm:$0xff]  }
   0x7   :  { %245 = vmatpush1.bf16.msra.mxu0 %v776_v3  ;;  %v822_v16 = vld [vmem:[%s1216_s3 + $0x4] ss:$8 sps:$4 sm:$0xff]   ;;  %274 = vmatprep.mubr.bf16.mxu0 %v821_v15  ;;  %v827_v19 = vld [vmem:[%s1216_s3 + $0x10] ss:$8 sps:$4 sm:$0xff]   ;;  %v797_v23 = vld [vmem:[%s1214_s1 + $0x80] ss:$8 sps:$4 sm:$0xff]  }
   0x8   :  { %246 = vmatprep.subr.bf16.mxu0 %v777_v4  ;;  %515 = vmatprep.subr.bf16.mxu1 %v822_v16  ;;  %v794_v20 = vld [vmem:[%s1214_s1 + $0x70] ss:$8 sps:$4 sm:$0xff]   ;;  %v828_v21 = vld [vmem:[%s1216_s3 + $0x24] ss:$8 sps:$4 sm:$0xff]   ;;  %v830_v24 = vld [vmem:[%s1216_s3 + $0x20] ss:$8 sps:$4 sm:$0xff]  }
   0x9   :  { %516 = vmatpush1.bf16.msra.mxu1 %v824_v17  ;;  %v795_v22 = vld [vmem:[%s1214_s1 + $0x84] ss:$8 sps:$4 sm:$0xff]   ;;  %v798_v25 = vld [vmem:[%s1214_s1 + $0x94] ss:$8 sps:$4 sm:$0xff]   ;;  %v833_v27 = vld [vmem:[%s1216_s3 + $0x30] ss:$8 sps:$4 sm:$0xff]  }
   0xa   :  { %517 = vmatprep.subr.bf16.mxu1 %v825_v18  ;;  %v831_v26 = vld [vmem:[%s1216_s3 + $0x34] ss:$8 sps:$4 sm:$0xff]   ;;  %v800_v28 = vld [vmem:[%s1214_s1 + $0x90] ss:$8 sps:$4 sm:$0xff]   ;;  %v834_v29 = vld [vmem:[%s1216_s3 + $0x44] ss:$8 sps:$4 sm:$0xff]  }
   0xb   :  { %247 = vmatpush1.bf16.msra.mxu0 %v779_v5  ;;  %v801_v30 = vld [vmem:[%s1214_s1 + $0xa4] ss:$8 sps:$4 sm:$0xff]   ;;  %v836_v31 = vld [vmem:[%s1216_s3 + $0x40] ss:$8 sps:$4 sm:$0xff]  }
   0xc   :  { %248 = vmatprep.subr.bf16.mxu0 %v780_v6 }
   0xd   :  { %518 = vmatpush1.bf16.msra.mxu1 %v827_v19 }
   0xe   :  { %519 = vmatprep.subr.bf16.mxu1 %v828_v21 }
   0xf   :  { %249 = vmatpush1.bf16.msra.mxu0 %v782_v7 }
  0x10   :  { %250 = vmatprep.subr.bf16.mxu0 %v783_v8 }
  0x11   :  { %520 = vmatpush1.bf16.msra.mxu1 %v830_v24 }
  0x12   :  { %521 = vmatprep.subr.bf16.mxu1 %v831_v26 }
  0x13   :  { %251 = vmatpush1.bf16.msra.mxu0 %v785_v9 }
  0x14   :  { %252 = vmatprep.subr.bf16.mxu0 %v786_v10 }
  0x15   :  { %522 = vmatpush1.bf16.msra.mxu1 %v833_v27 }
  0x17   :  { %253 = vmatpush1.bf16.msra.mxu0 %v788_v11 }
  0x18   :  { %254 = vmatprep.subr.bf16.mxu0 %v789_v12 }
  0x1b   :  { %255 = vmatpush1.bf16.msra.mxu0 %v791_v13 }
  0x1c   :  { %256 = vmatprep.subr.bf16.mxu0 %v792_v14 }
  0x1f   :  { %257 = vmatpush1.bf16.msra.mxu0 %v794_v20 }
  0x20   :  { %258 = vmatprep.subr.bf16.mxu0 %v795_v22 }
  0x23   :  { %259 = vmatpush1.bf16.msra.mxu0 %v797_v23 }
  0x24   :  { %260 = vmatprep.subr.bf16.mxu0 %v798_v25 }
  0x25   :  { %13 = vsyncpa [#allocation3], 0  ;;  %v803_v32 = vld [vmem:[%s1214_s1 + $0xa0] ss:$8 sps:$4 sm:$0xff]   ;;  %523 = vmatprep.subr.bf16.mxu1 %v834_v29  ;;  %v837_v33 = vld [vmem:[%s1216_s3 + $0x54] ss:$8 sps:$4 sm:$0xff]   ;;  %v62_v7 = vlaneseq }
  0x26   :  { %v804_v34 = vld [vmem:[%s1214_s1 + $0xb4] ss:$8 sps:$4 sm:$0xff]   ;;  %524 = vmatpush1.bf16.msra.mxu1 %v836_v31  ;;  %v839_v35 = vld [vmem:[%s1216_s3 + $0x50] ss:$8 sps:$4 sm:$0xff]   ;;  %v840_v37 = vld [vmem:[%s1216_s3 + $0x64] ss:$8 sps:$4 sm:$0xff]  }
  0x27   :  { %261 = vmatpush1.bf16.msra.mxu0 %v800_v28  ;;  %v806_v36 = vld [vmem:[%s1214_s1 + $0xb0] ss:$8 sps:$4 sm:$0xff]   ;;  %525 = vmatprep.subr.bf16.mxu1 %v837_v33  ;;  %v807_v38 = vld [vmem:[%s1214_s1 + $0xc4] ss:$8 sps:$4 sm:$0xff]   ;;  %v842_v39 = vld [vmem:[%s1216_s3 + $0x60] ss:$8 sps:$4 sm:$0xff]  }
  0x28   :  { %262 = vmatprep.subr.bf16.mxu0 %v801_v30  ;;  %v809_v40 = vld [vmem:[%s1214_s1 + $0xc0] ss:$8 sps:$4 sm:$0xff]   ;;  %v810_v41 = vld [vmem:[%s1214_s1 + $0xd4] ss:$8 sps:$4 sm:$0xff]   ;;  %v812_v42 = vld [vmem:[%s1214_s1 + $0xd0] ss:$8 sps:$4 sm:$0xff]  }
  0x29   :  { %v813_v43 = vld [vmem:[%s1214_s1 + $0xe4] ss:$8 sps:$4 sm:$0xff]   ;;  %v815_v44 = vld [vmem:[%s1214_s1 + $0xe0] ss:$8 sps:$4 sm:$0xff]   ;;  %v816_v45 = vld [vmem:[%s1214_s1 + $0xf4] ss:$8 sps:$4 sm:$0xff]  }
  0x2a   :  { %526 = vmatpush1.bf16.msra.mxu1 %v839_v35  ;;  %v818_v46 = vld [vmem:[%s1214_s1 + $0xf0] ss:$8 sps:$4 sm:$0xff]   ;;  %v819_v47 = vld [vmem:[%s1213_s0] ss:$8 sps:$4 sm:$0xff]   ;;  %v843_v48 = vld [vmem:[%s1216_s3 + $0x74] ss:$8 sps:$4 sm:$0xff]  }
  0x2b   :  { %263 = vmatpush1.bf16.msra.mxu0 %v803_v32  ;;  %527 = vmatprep.subr.bf16.mxu1 %v840_v37  ;;  %v845_v49 = vld [vmem:[%s1216_s3 + $0x70] ss:$8 sps:$4 sm:$0xff]   ;;  %v846_v50 = vld [vmem:[%s1216_s3 + $0x84] ss:$8 sps:$4 sm:$0xff]   ;;  %v848_v51 = vld [vmem:[%s1216_s3 + $0x80] ss:$8 sps:$4 sm:$0xff]  }
  0x2c   :  { %264 = vmatprep.subr.bf16.mxu0 %v804_v34  ;;  %v849_v52 = vld [vmem:[%s1216_s3 + $0x94] ss:$8 sps:$4 sm:$0xff]   ;;  %v851_v53 = vld [vmem:[%s1216_s3 + $0x90] ss:$8 sps:$4 sm:$0xff]   ;;  %v852_v54 = vld [vmem:[%s1216_s3 + $0xa4] ss:$8 sps:$4 sm:$0xff]  }
  0x2d   :  { %v854_v55 = vld [vmem:[%s1216_s3 + $0xa0] ss:$8 sps:$4 sm:$0xff]   ;;  %v855_v56 = vld [vmem:[%s1216_s3 + $0xb4] ss:$8 sps:$4 sm:$0xff]   ;;  %v857_v57 = vld [vmem:[%s1216_s3 + $0xb0] ss:$8 sps:$4 sm:$0xff]  }
  0x2e   :  { %528 = vmatpush1.bf16.msra.mxu1 %v842_v39  ;;  %v858_v58 = vld [vmem:[%s1216_s3 + $0xc4] ss:$8 sps:$4 sm:$0xff]   ;;  %v860_v59 = vld [vmem:[%s1216_s3 + $0xc0] ss:$8 sps:$4 sm:$0xff]   ;;  %v861_v60 = vld [vmem:[%s1216_s3 + $0xd4] ss:$8 sps:$4 sm:$0xff]  }
  0x2f   :  { %265 = vmatpush1.bf16.msra.mxu0 %v806_v36  ;;  %529 = vmatprep.subr.bf16.mxu1 %v843_v48  ;;  %v863_v61 = vld [vmem:[%s1216_s3 + $0xd0] ss:$8 sps:$4 sm:$0xff]   ;;  %v864_v62 = vld [vmem:[%s1216_s3 + $0xe4] ss:$8 sps:$4 sm:$0xff]   ;;  %v866_v63 = vld [vmem:[%s1216_s3 + $0xe0] ss:$8 sps:$4 sm:$0xff]  }
  0x30   :  { %266 = vmatprep.subr.bf16.mxu0 %v807_v38  ;;  %v867_v0 = vld [vmem:[%s1216_s3 + $0xf4] ss:$8 sps:$4 sm:$0xff]   ;;  %v869_v1 = vld [vmem:[%s1216_s3 + $0xf0] ss:$8 sps:$4 sm:$0xff]   ;;  %v1160_v2 = vld [vmem:[%s1218_s5] sm:$0xff]  ;;  %v914_v4 = vmov 0  }
  0x31   :  { %v1165_v3 = vld [vmem:[%s1218_s5 + $0x8] sm:$0xff]  ;;  %769 = vset.pattern.permute.xlu1 %v914_v4  ;;  %vm574_vm0 = vcmp.gt.s32.totalorder %v1160_v2, 0  ;;  %770 = vset.pattern.permute.xlu0 %v914_v4  ;;  %v1171_v8 = vshrl.u32 %v62_v7, 7  ;;  %v60_v10 = vld [vmem:[%s1215_s2] sm:$0x3]  ;;  %vm566_vm6 = vcmp.ge.s32.totalorder %v1160_v2, 0 }
  0x32   :  { %530 = vmatpush1.bf16.msra.mxu1 %v845_v49  ;;  %vm576_vm1 = vcmp.gt.s32.totalorder %v1165_v3, 0  ;;  %v575_v5 = vsel %vm574_vm0, %v1160_v2, 0  ;;  %vm567_vm7 = vcmp.ge.s32.totalorder %v1165_v3, 0  ;;  %vm635_vm8 = vcmask 7168  }
  0x33   :  { %267 = vmatpush1.bf16.msra.mxu0 %v809_v40  ;;  %531 = vmatprep.subr.bf16.mxu1 %v846_v50  ;;  %v577_v6 = vsel %vm576_vm1, %v1165_v3, 0  ;;  %v64_v9 = vsub.s32 0, %v1171_v8  ;;  %v68_v11 = vsub.s32 1, %v1171_v8 }
  0x34   :  { %268 = vmatprep.subr.bf16.mxu0 %v810_v41  ;;  %612 = vperm.xlu1 %769, %v575_v5  }
  0x35   :  { %v65_v12 = vrot.slane %v60_v10, %v64_v9  ;;  %v69_v13 = vrot.slane %v60_v10, %v68_v11 }
  0x36   :  { %532 = vmatpush1.bf16.msra.mxu1 %v848_v51 }
  0x37   :  { %269 = vmatpush1.bf16.msra.mxu0 %v812_v42  ;;  %533 = vmatprep.subr.bf16.mxu1 %v849_v52 }
  0x38   :  { %270 = vmatprep.subr.bf16.mxu0 %v813_v43  ;;  %615 = vperm.xlu1 %769, %v577_v6  }
  0x3a   :  { %534 = vmatpush1.bf16.msra.mxu1 %v851_v53 }
  0x3b   :  { %271 = vmatpush1.bf16.msra.mxu0 %v815_v44  ;;  %535 = vmatprep.subr.bf16.mxu1 %v852_v54 }
  0x3c   :  { %272 = vmatprep.subr.bf16.mxu0 %v816_v45 }
  0x3e   :  { %536 = vmatpush1.bf16.msra.mxu1 %v854_v55 }
  0x3f   :  { %273 = vmatpush1.bf16.msra.mxu0 %v818_v46  ;;  %537 = vmatprep.subr.bf16.mxu1 %v855_v56 }
  0x42   :  { %275 = vmatmul.mubr.bf16.vlgmr.msra.gmra.mrb[0].mxu0 %v819_v47  ;;  %538 = vmatpush1.bf16.msra.mxu1 %v857_v57 }
  0x43   :  { %539 = vmatprep.subr.bf16.mxu1 %v858_v58 }
  0x46   :  { %540 = vmatpush1.bf16.msra.mxu1 %v860_v59 }
  0x47   :  { %541 = vmatprep.subr.bf16.mxu1 %v861_v60  ;;  %v1178_v60 = vand.u32 127, %v62_v7 }
  0x4a   :  { %542 = vmatpush1.bf16.msra.mxu1 %v863_v61 }
  0x4b   :  { %543 = vmatprep.subr.bf16.mxu1 %v864_v62  ;;  %v610_v62 = vadd.s32 128, %v1178_v60 }
  0x4e   :  { %544 = vmatpush1.bf16.msra.mxu1 %v866_v63 }
  0x4f   :  { %545 = vmatprep.subr.bf16.mxu1 %v867_v0 }
  0x52   :  { %546 = vmatpush1.bf16.msra.mxu1 %v869_v1 }
  0xb3   :  { %v613_v61 = vpop.permute.xlu1 %612 }
  0xb4   :  { %vm617_vm2 = vcmp.eq.s32.totalorder %v1178_v60, %v613_v61  ;;  %vm618_vm3 = vcmp.eq.s32.totalorder %v610_v62, %v613_v61 }
  0xb7   :  { %v616_v63 = vpop.permute.xlu1 %615 }
  0xb8   :  { %vm619_vm4 = vcmp.eq.s32.totalorder %v1178_v60, %v616_v63  ;;  %vm620_vm5 = vcmp.eq.s32.totalorder %v610_v62, %v616_v63 }
 0x115   :  { %v276_v14 = vpop.f32.mrb[0].mxu0 }
 0x116   :  { %v277_v15 = vadd.f32 %v276_v14, %v65_v12  ;;  %v278_v16 = vpop.f32.mrb[1].mxu0 }
 0x117   :  { %v279_v17 = vadd.f32 %v278_v16, %v69_v13  ;;  %v280_v18 = vpop.f32.mrb[2].mxu0 }
 0x118   :  { %v285_v19 = vmul.f32 %v277_v15, %v277_v15  ;;  %v281_v20 = vadd.f32 %v280_v18, %v65_v12  ;;  %v282_v21 = vpop.f32.mrb[3].mxu0 }
 0x119   :  { %v286_v22 = vmul.f32 %v279_v17, %v279_v17  ;;  %v283_v23 = vadd.f32 %v282_v21, %v69_v13 }
 0x11a   :  { %v289_v24 = vmul.f32 %v285_v19, %v277_v15  ;;  %v287_v25 = vmul.f32 %v281_v20, %v281_v20 }
 0x11b   :  { %v290_v26 = vmul.f32 %v286_v22, %v279_v17  ;;  %v288_v27 = vmul.f32 %v283_v23, %v283_v23 }
 0x11c   :  { %v293_v28 = vmul.f32 0.044715, %v289_v24  ;;  %v291_v29 = vmul.f32 %v287_v25, %v281_v20 }
 0x11d   :  { %v294_v30 = vmul.f32 0.044715, %v290_v26  ;;  %v292_v31 = vmul.f32 %v288_v27, %v283_v23 }
 0x11e   :  { %v297_v32 = vadd.f32 %v293_v28, %v277_v15  ;;  %v295_v33 = vmul.f32 0.044715, %v291_v29 }
 0x11f   :  { %v296_v34 = vmul.f32 0.044715, %v292_v31  ;;  %v298_v35 = vadd.f32 %v294_v30, %v279_v17  ;;  %v564_v31 = vld [vmem:[%s1217_s4] sm:$0xff] }
 0x120   :  { %v301_v36 = vmul.f32 0.7978846, %v297_v32  ;;  %v299_v37 = vadd.f32 %v295_v33, %v281_v20  ;;  %v915_v32 = vmov 0.0  }
 0x121   :  { %v300_v38 = vadd.f32 %v296_v34, %v283_v23  ;;  %v302_v39 = vmul.f32 0.7978846, %v298_v35  ;;  %v758_v33 = vsel %vm566_vm6, 1.0, %v915_v32  ;;  %v565_v34 = vld [vmem:[%s1217_s4 + $0x8] sm:$0xff]  ;;  %v759_v35 = vsel %vm567_vm7, 1.0, %v915_v32  ;;  %s916_s4 = smov [#allocation2]  }
 0x122   :  { %870 = vtanh.f32 %v301_v36  ;;  %v303_v40 = vmul.f32 0.7978846, %v299_v37  ;;  %v572_v36 = vmul.f32 %v758_v33, %v564_v31  ;;  %v573_v37 = vmul.f32 %v759_v35, %v565_v34  ;;  %s677_s21 = sshll.u32 %s916_s4, 4  ;;  %s678_s21 = int_to_ptr.vmem [resolvable:$true] %s677_s21 }
 0x123   :  { %v304_v41 = vmul.f32 0.7978846, %v300_v38  ;;  %872 = vtanh.f32 %v302_v39  ;;  %s890_s22 = scalar_lea.vmem %s678_s21, 512  ;;  %p895_p1 = scmp.lt.s32.totalorder %s678_s21, %s678_s21 }
 0x124   :  { %874 = vtanh.f32 %v303_v40  ;;  %v648_v38 = vsel %vm635_vm8, %v572_v36, 0.0  ;;  %v649_v2 = vsel %vm635_vm8, %v573_v37, 0.0  ;;  %p891_p0 = scmp.ne.s32.totalorder %s678_s21, %s890_s22  ;;  %p896_p2 = scmp.lt.s32.totalorder %s890_s22, %s890_s22 }
 0x125   :  { %876 = vtanh.f32 %v304_v41  ;;  %v650_v39 = vadd.f32 %v649_v2, %v648_v38 }
 0x126   :  { %p897_p3 = por %p896_p2, %p895_p1 }
 0x128   :  { %p898_p4 = pnand %p897_p3, %p891_p0 }
 0x12c   :  { %v871_v42 = vpop.eup %870 }
 0x12d   :  { %v873_v43 = vpop.eup %872  ;;  %v309_v44 = vadd.f32 1.0, %v871_v42 }
 0x12e   :  { %v875_v45 = vpop.eup %874  ;;  %v310_v46 = vadd.f32 1.0, %v873_v43 }
 0x12f   :  { %v877_v47 = vpop.eup %876  ;;  %v311_v48 = vadd.f32 1.0, %v875_v45  ;;  %v313_v49 = vmul.f32 0.5, %v309_v44 }
 0x130   :  { %v312_v50 = vadd.f32 1.0, %v877_v47  ;;  %v314_v51 = vmul.f32 0.5, %v310_v46 }
 0x131   :  { %v315_v52 = vmul.f32 0.5, %v311_v48  ;;  %v317_v54 = vmul.f32 %v313_v49, %v277_v15 }
 0x132   :  { %v316_v53 = vmul.f32 0.5, %v312_v50  ;;  %v318_v56 = vmul.f32 %v314_v51, %v279_v17 }
 0x133   :  { %v319_v55 = vmul.f32 %v315_v52, %v281_v20 }
 0x134   :  { %v320_v57 = vmul.f32 %v316_v53, %v283_v23 }
 0x135   :  { %v321_v58 = vpack.c.bf16 %v319_v55, %v317_v54 }
 0x136   :  { %v322_v59 = vpack.c.bf16 %v320_v57, %v318_v56 }
 0x138   :  { %547 = vmatprep.mubr.bf16.mxu1 %v322_v59 }
 0x139   :  { %548 = vmatmul.mubr.bf16.vlgmr.msra.gmra.mrb[0].mxu1 %v321_v58 }
 0x20c   :  { %v549_v0 = vpop.f32.mrb[0].mxu1 }
 0x20d   :  { %558 = vst [vmem:[#allocation2] sm:$0xff] %v549_v0  ;;  %v551_v1 = vpop.f32.mrb[1].mxu1  ;;  %v621_v4 = vsel %vm617_vm2, %v549_v0, 0.0 }
 0x20e   :  { %559 = vst [vmem:[#allocation2 + $0x8] sm:$0xff] %v551_v1  ;;  %v553_v5 = vpop.f32.mrb[2].mxu1  ;;  %v578_v6 = vmax.f32 %v549_v0, %v551_v1  ;;  %v622_v9 = vsel %vm618_vm3, %v551_v1, 0.0 }
 0x20f   :  { %560 = vst [vmem:[#allocation2 + $0x10] sm:$0xff] %v553_v5  ;;  %v555_v7 = vpop.f32.mrb[3].mxu1  ;;  %v625_v10 = vadd.f32 %v622_v9, %v621_v4  ;;  %v623_v11 = vsel %vm619_vm4, %v553_v5, 0.0 }
 0x210   :  { %561 = vst [vmem:[#allocation2 + $0x18] sm:$0xff] %v555_v7  ;;  %579 = vmax.xlane.f32.xlu0 %v578_v6  ;;  %v581_v12 = vmax.f32 %v553_v5, %v555_v7  ;;  %v624_v13 = vsel %vm620_vm5, %v555_v7, 0.0 }
 0x211   :  { %v628_v14 = vadd.f32 %v624_v13, %v623_v11 }
 0x214   :  { %582 = vmax.xlane.f32.xlu0 %v581_v12 }
 0x29d   :  { %v580_v15 = vpop.xlane.xlu0 %579 }
 0x29e   :  { %v584_v16 = vsub.f32 %v549_v0, %v580_v15  ;;  %v585_v17 = vsub.f32 %v551_v1, %v580_v15 }
 0x2a0   :  { %v588_v18 = vmul.f32 1.442695, %v584_v16  ;;  %v590_v19 = vmul.f32 1.442695, %v585_v17 }
 0x2a1   :  { %v583_v20 = vpop.xlane.xlu0 %582 }
 0x2a2   :  { %878 = vpow2.f32 %v588_v18  ;;  %v586_v21 = vsub.f32 %v553_v5, %v583_v20  ;;  %v587_v22 = vsub.f32 %v555_v7, %v583_v20 }
 0x2a3   :  { %880 = vpow2.f32 %v590_v19 }
 0x2a4   :  { %v592_v23 = vmul.f32 1.442695, %v586_v21  ;;  %v594_v24 = vmul.f32 1.442695, %v587_v22 }
 0x2a6   :  { %882 = vpow2.f32 %v592_v23 }
 0x2a7   :  { %884 = vpow2.f32 %v594_v24 }
 0x2ac   :  { %v879_v25 = vpop.eup %878 }
 0x2ad   :  { %v881_v26 = vpop.eup %880 }
 0x2ae   :  { %v596_v27 = vadd.f32 %v881_v26, %v879_v25 }
 0x2b0   :  { %v883_v28 = vpop.eup %882  ;;  %597 = vadd.xlane.f32.xlu0 %v596_v27 }
 0x2b1   :  { %v885_v29 = vpop.eup %884 }
 0x2b2   :  { %v599_v30 = vadd.f32 %v885_v29, %v883_v28 }
 0x2b4   :  { %626 = vadd.xlane.f32.xlu0 %v625_v10  ;;  %600 = vadd.xlane.f32.xlu1 %v599_v30 }
 0x2b8   :  { %629 = vadd.xlane.f32.xlu0 %v628_v14 }
 0x33d   :  { %v598_v3 = vpop.xlane.xlu0 %597 }
 0x33e   :  { %886 = vlog2.f32 %v598_v3 }
 0x341   :  { %v601_v40 = vpop.xlane.xlu1 %600  ;;  %v627_v43 = vpop.xlane.xlu0 %626 }
 0x342   :  { %888 = vlog2.f32 %v601_v40 }
 0x345   :  { %v630_v49 = vpop.xlane.xlu0 %629 }
 0x348   :  { %v887_v41 = vpop.eup %886 }
 0x349   :  { %v603_v42 = vmul.f32 0.6931472, %v887_v41 }
 0x34b   :  { %v606_v44 = vadd.f32 %v603_v42, %v580_v15 }
 0x34c   :  { %v889_v45 = vpop.eup %888 }
 0x34d   :  { %v605_v46 = vmul.f32 0.6931472, %v889_v45  ;;  %v631_v47 = vsub.f32 %v606_v44, %v627_v43 }
 0x34f   :  { %v607_v48 = vadd.f32 %v605_v46, %v583_v20  ;;  %v633_v50 = vmul.f32 %v631_v47, %v572_v36 }
 0x351   :  { %v632_v51 = vsub.f32 %v607_v48, %v630_v49  ;;  %v636_v53 = vsel %vm635_vm8, %v633_v50, 0.0 }
 0x353   :  { %v634_v52 = vmul.f32 %v632_v51, %v573_v37 }
 0x355   :  { %v637_v54 = vsel %vm635_vm8, %v634_v52, 0.0 }
 0x356   :  { %v638_v55 = vadd.f32 %v637_v54, %v636_v53 }
 0x358   :  { %639 = vadd.xlane.f32.xlu0 %v638_v55 }
 0x35c   :  { %651 = vadd.xlane.f32.xlu0 %v650_v39 }
 0x35d   :  { %901 = shalt.err (!%p898_p4)
}
 0x35e   :  { %s902_s25 = scalar_lea.hbm %s1219_s6, 512 }
 0x35f   :  { %p903_p5 = scmp.ne.s32.totalorder %s1219_s6, %s902_s25  ;;  %p906_p6 = scmp.lt.u32.totalorder %s902_s25, %s1219_s6 }
 0x361   :  { %p908_p7 = pnand %p906_p6, %p903_p5 }
 0x363   :  { %911 = shalt.err (!%p908_p7)
}
 0x364   :  { %s917_s30 = smov 256   ;;  %s918_s8 = smov 16   ;;  %vm662_vm9 = vcmp.eq.s32.totalorder %v1171_v8, 0  ;;  %vm665_vm10 = vcmp.eq.s32.totalorder %v1178_v60, 1  ;;  %vm663_vm11 = vcmp.eq.s32.totalorder %v1178_v60, 0 }
 0x365   :  { %683 = dma.vmem_to_hbm [thread:$0]  %s678_s21, 512, %s1219_s6, [#allocation3], %s917_s30, %s917_s30, %s918_s8   ;;  %vm666_vm12 = vmand %vm662_vm9, %vm665_vm10 }
 0x366   :  { %vm664_vm13 = vmand %vm662_vm9, %vm663_vm11 }
 0x3e5   :  { %v640_v56 = vpop.xlane.xlu0 %639 }
 0x3e6   :  { %v641_v57 = vrot.slane %v640_v56, 4 }
 0x3e8   :  { %v642_v58 = vadd.f32 %v641_v57, %v640_v56 }
 0x3e9   :  { %v652_v59 = vpop.xlane.xlu0 %651 }
 0x3ea   :  { %v643_v61 = vrot.slane %v642_v58, 2  ;;  %v653_v62 = vrot.slane %v652_v59, 4 }
 0x3ec   :  { %v654_v63 = vadd.f32 %v653_v62, %v652_v59  ;;  %v644_v0 = vadd.f32 %v643_v61, %v642_v58 }
 0x3ee   :  { %v655_v1 = vrot.slane %v654_v63, 2  ;;  %v645_v4 = vrot.slane %v644_v0, 1 }
 0x3f0   :  { %v656_v5 = vadd.f32 %v655_v1, %v654_v63  ;;  %v646_v6 = vadd.f32 %v645_v4, %v644_v0 }
 0x3f2   :  { %760 = vpush %v646_v6  ;;  %v657_v9 = vrot.slane %v656_v5, 1 }
 0x3f4   :  { %v658_v7 = vadd.f32 %v657_v9, %v656_v5 }
 0x3f6   :  { %762 = vpush %v658_v7 }
 0x423   :  { %s761_s6 = spop %760 }
 0x424   :  { %v669_v11 = vstv %s761_s6 }
 0x427   :  { %s763_s1 = spop %762 }
 0x428   :  { %v667_v10 = vstv %s763_s1 }
 0x429   :  { %v668_v12 = vsel %vm666_vm12, %v667_v10, 0.0 }
 0x42a   :  { %v670_v13 = vsel %vm664_vm13, %v669_v11, %v668_v12 }
 0x42b   :  { %671 = vst [vmem:[%s1220_s7] sm:$0xff] %v670_v13 }
 0x42c   :  { %912 = dma.done.wait [#allocation3], 512  }
 0x42d   :  { %913 = vsyncadd [#allocation3], 4294966784 }
 0x42e   :  { %691 = vsyncpa [#allocation3], 1 }

</bundles_post_ra>
